<compile_context>
chip_gen: v5e
topology: v5e:2x2
jax: 0.10.0
libtpu: 0.0.40
codegen_flags: <defaults>
</compile_context>

<pallas_src>
import functools

import jax
import jax.numpy as jnp
from jax.experimental import pallas as pl
from jax.experimental.pallas import tpu as pltpu


# --------------------------------------------------------------------------
# Tiling heuristics
# --------------------------------------------------------------------------

def _chip_plan():
    """Return (target_block_bytes, vmem_limit_bytes_or_None, num_tensorcores).

    v7x : 3.2 TB/s HBM, 64 MiB physical VMEM, 2 TCs  -> big blocks + raised
          scoped-VMEM limit (4 x 7 MiB in flight < 48 MiB < 64 MiB physical).
    v6e : 4 MiB blocks; 4 x 4 MiB = 16 MiB fits the 32 MiB default limit.
    v5e / unknown: 3 MiB blocks; 4 x 3 MiB = 12 MiB fits the 16 MiB default.
    """
    kind = ""
    try:
        dev = jax.devices()[0]
        if getattr(dev, "platform", "") == "tpu":
            kind = (getattr(dev, "device_kind", "") or "").lower()
    except Exception:
        pass
    if "v7" in kind:
        return 7 << 20, 48 << 20, 2
    if "v6" in kind:
        return 4 << 20, None, 1
    # v5e and anything we do not recognize: conservative, fits every default
    # scoped-VMEM limit with no override.
    return 3 << 20, None, 1


def _sublane_granule(dtype):
    """Sublane packing granule: 8 for f32, 16 for bf16, 32 for int8/fp8."""
    return max(8, 32 // jnp.dtype(dtype).itemsize)


def _round_up(x, m):
    return ((x + m - 1) // m) * m


def _choose_row_tile(rows, row_bytes, granule, target_block_bytes, num_cores):
    """Tile along the leading (row) axis giving ~target_block_bytes blocks."""
    rt = max(1, target_block_bytes // max(1, row_bytes))
    rt = max(granule, (rt // granule) * granule)
    if num_cores > 1:
        # Feed each TensorCore at least ~2 grid steps via the 'parallel' axis,
        # but never shrink blocks below ~2 MiB (per-step overhead threshold).
        min_rt = max(granule,
                     (((2 << 20) // max(1, row_bytes)) // granule) * granule)
        want_steps = 2 * num_cores
        rt_steps = _round_up(max(1, -(-rows // want_steps)), granule)
        rt = min(rt, max(rt_steps, min_rt))
    if rt >= rows:
        # Single full-extent block along the row axis: always a legal block
        # dim (equals the array dim) and avoids any OOB rows.
        return int(rows)
    return int(rt)


def _compiler_params(vmem_limit):
    return pltpu.CompilerParams(dimension_semantics=("parallel",),
                                vmem_limit_bytes=vmem_limit)


# --------------------------------------------------------------------------
# Kernel 1: exact Attention_mask semantics
# --------------------------------------------------------------------------

def _attention_mask_kernel(x_ref, o_ref, *, scale):
    # x_ref / o_ref: (row_tile, H*W) VMEM tiles. Each row is an independent
    # (n, c) feature map; a ragged last block only produces garbage in rows
    # whose writeback Pallas masks out.
    x = x_ref[...]
    s = jnp.sum(x.astype(jnp.float32), axis=1, keepdims=True)   # (rt, 1) f32
    inv = scale * pl.reciprocal(s, approx=False)                  # exact
    o_ref[...] = (x.astype(jnp.float32) * inv).astype(o_ref.dtype)


def attention_mask(x, *, row_tile=None):
    """x: (N, C, H, W). Returns x / sum_{H,W}(x) * H * W * 0.5."""
    N, C, H, W = x.shape
    rows = N * C
    cols = H * W
    scale = float(H) * float(W) * 0.5
    itemsize = jnp.dtype(x.dtype).itemsize

    target_block_bytes, vmem_limit, num_cores = _chip_plan()
    if row_tile is None:
        row_tile = _choose_row_tile(rows, cols * itemsize,
                                    _sublane_granule(x.dtype),
                                    target_block_bytes, num_cores)

    # Contiguous NCHW -> (N*C, H*W): metadata-only reshape, no HBM copy.
    x2d = x.reshape(rows, cols)
    grid = (pl.cdiv(rows, row_tile),)

    cost = pl.CostEstimate(
        flops=2 * rows * cols,                       # row sums + normalize
        transcendentals=0,
        bytes_accessed=2 * rows * cols * itemsize,
    )

    out2d = pl.pallas_call(
        functools.partial(_attention_mask_kernel, scale=scale),
        out_shape=jax.ShapeDtypeStruct((rows, cols), x.dtype),
        grid_spec=pltpu.PrefetchScalarGridSpec(
            num_scalar_prefetch=0,
            grid=grid,
            in_specs=[pl.BlockSpec((row_tile, cols), lambda i: (i, 0))],
            out_specs=pl.BlockSpec((row_tile, cols), lambda i: (i, 0)),
        ),
        compiler_params=_compiler_params(vmem_limit),
        cost_estimate=cost,
    )(x2d)

    return out2d.reshape(N, C, H, W)


# --------------------------------------------------------------------------
# Kernel 2: fused sigmoid -> Attention_mask -> gating multiply
# (matches QTS_CAN: g = attn_mask(sigmoid(att)); gated = d * g)
# --------------------------------------------------------------------------

def _fused_gate_kernel(att_ref, d_ref, o_ref, *, scale):
    # att_ref: (bn, H*W) pre-sigmoid attention logits (1 channel per map)
    # d_ref / o_ref: (bn, C, H*W) motion-branch features / gated output
    g = jax.nn.sigmoid(att_ref[...].astype(jnp.float32))          # EUP slack
    s = jnp.sum(g, axis=1, keepdims=True)                          # (bn, 1)
    mask = g * (scale * pl.reciprocal(s, approx=False))            # (bn, cols)
    o_ref[...] = (d_ref[...].astype(jnp.float32)
                  * mask[:, None, :]).astype(o_ref.dtype)


def fused_sigmoid_attention_gate(att_logits, motion, *, batch_tile=None):
    """att_logits: (N, 1, H, W) pre-sigmoid; motion: (N, C, H, W).

    Returns motion * Attention_mask(sigmoid(att_logits)) without writing the
    intermediate mask (or the sigmoid) to HBM.
    """
    N, Ca, H, W = att_logits.shape
    Nd, C, Hd, Wd = motion.shape
    assert Ca == 1 and (Nd, Hd, Wd) == (N, H, W)
    cols = H * W
    scale = float(H) * float(W) * 0.5
    itemsize = jnp.dtype(motion.dtype).itemsize

    target_block_bytes, vmem_limit, num_cores = _chip_plan()
    if batch_tile is None:
        # Block bytes are dominated by the (bn, C, cols) motion tile.
        batch_tile = _choose_row_tile(N, C * cols * itemsize,
                                      _sublane_granule(att_logits.dtype),
                                      target_block_bytes, num_cores)

    att2d = att_logits.reshape(N, cols)
    d3 = motion.reshape(N, C, cols)
    grid = (pl.cdiv(N, batch_tile),)

    cost = pl.CostEstimate(
        flops=2 * N * cols + N * C * cols,
        transcendentals=N * cols,                     # sigmoid
        bytes_accessed=(N * cols + 2 * N * C * cols) * itemsize,
    )

    out3 = pl.pallas_call(
        functools.partial(_fused_gate_kernel, scale=scale),
        out_shape=jax.ShapeDtypeStruct((N, C, cols), motion.dtype),
        grid_spec=pltpu.PrefetchScalarGridSpec(
            num_scalar_prefetch=0,
            grid=grid,
            in_specs=[pl.BlockSpec((batch_tile, cols), lambda i: (i, 0)),
                      pl.BlockSpec((batch_tile, C, cols), lambda i: (i, 0, 0))],
            out_specs=pl.BlockSpec((batch_tile, C, cols), lambda i: (i, 0, 0)),
        ),
        compiler_params=_compiler_params(vmem_limit),
        cost_estimate=cost,
    )(att2d, d3)

    return out3.reshape(N, C, H, W)


# --------------------------------------------------------------------------
# References + self-test
# --------------------------------------------------------------------------

def attention_mask_ref(x):
    xsum = jnp.sum(x, axis=(2, 3), keepdims=True)
    return x / xsum * x.shape[2] * x.shape[3] * 0.5


if __name__ == "__main__":
    key = jax.random.PRNGKey(0)
    k1, k2, k3, k4 = jax.random.split(key, 4)

    # Case 1: exact Attention_mask module semantics. In QTS_CAN the mask input
    # follows a sigmoid, so it is strictly positive.
    N, C, H, W = 2, 4, 16, 16
    x1 = jax.nn.sigmoid(jax.random.normal(k1, (N, C, H, W), dtype=jnp.float32))
    out1 = jax.block_until_ready(attention_mask(x1))
    ref1 = attention_mask_ref(x1)
    assert out1.shape == ref1.shape
    assert jnp.allclose(out1, ref1, atol=1e-5, rtol=1e-5), "mismatch (case 1)"

    # Case 2: ragged last row-block (rows not a multiple of the tile) and a
    # non-128-multiple H*W (masked-store path), with an explicit small tile.
    N2, C2, H2, W2 = 3, 5, 18, 18           # rows = 15, cols = 324
    x2 = jax.nn.sigmoid(jax.random.normal(k2, (N2, C2, H2, W2),
                                          dtype=jnp.float32))
    out2 = jax.block_until_ready(attention_mask(x2, row_tile=8))
    ref2 = attention_mask_ref(x2)
    assert out2.shape == ref2.shape
    assert jnp.allclose(out2, ref2, atol=1e-5, rtol=1e-5), "mismatch (case 2)"

    # Case 3: fused sigmoid -> attention mask -> gating multiply, i.e. the
    # g1/gated1 (and g2/gated2) sub-graph of QuaternionTSCAN.forward.
    att = jax.random.normal(k3, (N, 1, H, W), dtype=jnp.float32)
    d = jax.random.normal(k4, (N, C, H, W), dtype=jnp.float32)
    out3 = jax.block_until_ready(fused_sigmoid_attention_gate(att, d))
    ref3 = d * attention_mask_ref(jax.nn.sigmoid(att))
    assert out3.shape == ref3.shape
    assert jnp.allclose(out3, ref3, atol=1e-5, rtol=1e-5), "mismatch (case 3)"

    print("KERNEL_OK")
</pallas_src>

<mosaic_0001>
module attributes {stable_mosaic.version = 11 : i64} {
  func.func @_attention_mask_kernel(%arg0: i32, %arg1: memref<8x256xf32, #tpu.memory_space<vmem>>, %arg2: memref<8x256xf32, #tpu.memory_space<vmem>>) attributes {dimension_semantics = [#tpu.dimension_semantics<parallel>], iteration_bounds = array<i64: 1>, scalar_prefetch = 0 : i64, scratch_operands = 0 : i64, tpu.core_type = #tpu.core_type<tc>, window_params = [{transform_indices = @transform_0, window_bounds = array<i64: 8, 256>}, {transform_indices = @transform_1, window_bounds = array<i64: 8, 256>}]} {
    %c0 = arith.constant 0 : index
    %c0_0 = arith.constant 0 : index
    %0 = vector.load %arg1[%c0, %c0_0] : memref<8x256xf32, #tpu.memory_space<vmem>>, vector<8x256xf32>
    %cst = arith.constant dense<0.000000e+00> : vector<8xf32>
    %1 = vector.multi_reduction <add>, %0, %cst [1] : vector<8x256xf32> to vector<8xf32>
    %2 = vector.shape_cast %1 : vector<8xf32> to vector<8x1xf32>
    %3 = tpu.reciprocal %2 : vector<8x1xf32> -> vector<8x1xf32>
    %cst_1 = arith.constant 1.280000e+02 : f32
    %4 = vector.broadcast %cst_1 : f32 to vector<8x1xf32>
    %5 = arith.mulf %4, %3 : vector<8x1xf32>
    %6 = vector.broadcast %5 : vector<8x1xf32> to vector<8x256xf32>
    %7 = arith.mulf %0, %6 : vector<8x256xf32>
    %c0_2 = arith.constant 0 : index
    %c0_3 = arith.constant 0 : index
    %8 = vector.load %arg2[%c0_2, %c0_3] : memref<8x256xf32, #tpu.memory_space<vmem>>, vector<8x256xf32>
    tpu.vector_store %arg2[%c0_2, %c0_3], %7 {strides = array<i32>} : memref<8x256xf32, #tpu.memory_space<vmem>>, vector<8x256xf32>,
    return
  }
  func.func @transform_0(%arg0: i32) -> (i32, i32) {
    %c0_i32 = arith.constant 0 : i32
    %c0_i32_0 = arith.constant 0 : i32
    return %arg0, %c0_i32 : i32, i32
  }
  func.func @transform_1(%arg0: i32) -> (i32, i32) {
    %c0_i32 = arith.constant 0 : i32
    %c0_i32_0 = arith.constant 0 : i32
    return %arg0, %c0_i32 : i32, i32
  }
}

</mosaic_0001>

<bundles_post_ra>
// kernel: tpu_custom_call.1
= control target key start
LH: loop header
LB: loop body
LE: loop exit
PB: predicated region body
PF: predicated region fallthrough
CT: control target
= control target key end

     0   :  { %6 = vsyncpa [#allocation3], 0  ;;  %s138_s0 = inlined_call_operand.hbm [shape: f32[8,256], index: 0, kind: input, shape index: {}]   ;;  %s139_s1 = inlined_call_operand.hbm [shape: f32[8,256], index: 1, kind: output, shape index: {}]  }
   0x1   :  { %7 = vsyncpa [#allocation4], 0  ;;  %s13_s8 = sshll.u32 %s138_s0, 4  ;;  %s120_s9 = smov [#allocation2]   ;;  %s14_s8 = int_to_ptr.hbm [resolvable:$true] %s13_s8 }
   0x2   :  { %s15_s10 = sshll.u32 %s120_s9, 4  ;;  %s16_s10 = int_to_ptr.vmem [resolvable:$true] %s15_s10 }
   0x3   :  { %18 = dma.hbm_to_vmem [thread:$0]  %s14_s8, 256, %s16_s10, [#allocation3]  }
   0x4   :  { %116 = dma.done.wait [#allocation3], 256  }
   0x5   :  { %117 = vsyncadd [#allocation3], 4294967040  ;;  %v23_v0 = vld [vmem:[#allocation2] sm:$0xff]  ;;  %v24_v1 = vld [vmem:[#allocation2 + $0x8] sm:$0xff]  ;;  %s121_s0 = smov [#allocation5]   ;;  %s54_s14 = sshll.u32 %s139_s1, 4  ;;  %s55_s14 = int_to_ptr.hbm [resolvable:$true] %s54_s14 }
   0x6   :  { %v25_v2 = vadd.f32 %v24_v1, %v23_v0  ;;  %s52_s11 = sshll.u32 %s121_s0, 4  ;;  %s53_s11 = int_to_ptr.vmem [resolvable:$true] %s52_s11 }
   0x8   :  { %26 = vadd.xlane.f32.xlu0 %v25_v2 }
  0x7b   :  { %v27_v3 = vpop.xlane.xlu0 %26 }
  0x7c   :  { %66 = vrcp.f32 %v27_v3  ;;  %v39_v7 = vand.u32 2147483648, %v27_v3  ;;  %v37_v9 = vand.u32 2147483647, %v27_v3  ;;  %vm33_vm1 = vweird.f32 %v27_v3 }
  0x7e   :  { %v40_v11 = vor.u32 1.1754944e-38, %v39_v7  ;;  %vm38_vm3 = vcmp.eq.f32.partialorder %v37_v9, 8.507059e+37 }
  0x82   :  { %v67_v4 = vpop.eup %66 }
  0x83   :  { %v29_v5 = vmul.f32 %v67_v4, %v27_v3  ;;  %vm34_vm0 = vweird.f32 %v67_v4 }
  0x84   :  { %vm35_vm2 = vmor %vm33_vm1, %vm34_vm0 }
  0x85   :  { %v30_v6 = vsub.f32 1.0, %v29_v5 }
  0x87   :  { %v31_v8 = vmul.f32 %v67_v4, %v30_v6 }
  0x89   :  { %v32_v10 = vadd.f32 %v67_v4, %v31_v8 }
  0x8b   :  { %v36_v12 = vsel %vm35_vm2, %v67_v4, %v32_v10 }
  0x8c   :  { %v41_v13 = vsel %vm38_vm3, %v40_v11, %v36_v12 }
  0x8d   :  { %v42_v14 = vmul.f32 128.0, %v41_v13 }
  0x8f   :  { %v43_v15 = vmul.f32 %v42_v14, %v23_v0  ;;  %v44_v16 = vmul.f32 %v42_v14, %v24_v1 }
  0x91   :  { %45 = vst [vmem:[#allocation5] sm:$0xff] %v43_v15 }
  0x92   :  { %46 = vst [vmem:[#allocation5 + $0x8] sm:$0xff] %v44_v16 }
  0x93   :  { %57 = dma.vmem_to_hbm [thread:$0]  %s53_s11, 256, %s55_s14, [#allocation4]  }
  0x94   :  { %118 = dma.done.wait [#allocation4], 256  }
  0x95   :  { %119 = vsyncadd [#allocation4], 4294967040 }
  0x96   :  { %62 = vsyncpa [#allocation3], 1 }
  0x97   :  { %63 = vsyncpa [#allocation4], 1 }

</bundles_post_ra>
